<compile_context>
chip_gen: v7x
topology: tpu7x:2x2x1
jax: 0.10.0
libtpu: 0.0.40
codegen_flags: <defaults>
</compile_context>

<pallas_src>
import functools
import math

import jax
import jax.numpy as jnp
from jax.scipy.special import gammaln
from jax.experimental import pallas as pl
from jax.experimental.pallas import tpu as pltpu

_MIB = 1024 * 1024


def _round_up(x, m):
    return ((x + m - 1) // m) * m


def _round_down(x, m):
    return (x // m) * m


def _default_target_rows():
    """Per-generation folded-row target (~1M elements / ~4 MiB f32 per block)."""
    try:
        kind = jax.devices()[0].device_kind.lower()
    except Exception:
        kind = ""
    if "v5 lite" in kind or "v5e" in kind or "v5lite" in kind:
        return 4096          # ~2 MiB f32 blocks; v5e has the tightest scoped VMEM
    return 8192              # ~4 MiB f32 blocks for v6e / v7x


# ----------------------------------------------------------------------------
# Kernels
# ----------------------------------------------------------------------------
def _fold_kernel(z_ref, w_ref, sig_ref, out_ref, *, k, theta, tile_rows,
                 w_rows, total_rows, needs_mask):
    """Lane-dense folded block.

    z_ref   : [tile_rows, 128]  folded view of z (any float dtype; last block
                                may be partial -> masked)
    w_ref   : [w_rows, 128]     periodic per-lane weights (-alpha/-beta/0)
    sig_ref : [sig_tile, 128]   this block's slice of the sigma2 slab (1.0-padded)
    out_ref : [1, 8, 128]       lane-dense broadcast of this block's partial sum
    """
    zb = z_ref[...]
    if zb.dtype != jnp.float32:
        zb = zb.astype(jnp.float32)
    if needs_mask:
        row0 = pl.program_id(0) * tile_rows
        rows = row0 + jax.lax.broadcasted_iota(jnp.int32, (tile_rows, 1), 0)
        zb = jnp.where(rows < total_rows, zb, 0.0)

    w = w_ref[...]
    if w_rows == 1:
        lp = jnp.sum(zb * w)                                   # single fused mul+reduce
    else:
        zg = zb.reshape(tile_rows // w_rows, w_rows, 128)
        lp = jnp.sum(zg * w[None, :, :])

    # InverseGamma data terms for this block's sigma2 slice. EUP work is spread
    # evenly over the grid; 1.0-padded slots are corrected in the wrapper.
    s = sig_ref[...]
    lp = lp + (-(k + 1.0) * jnp.sum(jnp.log(s)) - theta * jnp.sum(1.0 / s))

    out_ref[...] = jnp.full(out_ref.shape, lp, dtype=out_ref.dtype)


def _plain_kernel(z_ref, w_ref, out_ref, *, k, theta, tile_s, n_samples, d,
                  needs_mask):
    """Un-folded fallback block (used when S*D % 128 != 0 or S is tiny).

    z_ref : [tile_s, D]   raw z block (no wrapper reshape/copy needed)
    w_ref : [1, D]        per-column weights (-alpha/-beta/0)
    """
    zb = z_ref[...]
    if zb.dtype != jnp.float32:
        zb = zb.astype(jnp.float32)
    valid = None
    if needs_mask:
        r0 = pl.program_id(0) * tile_s
        rows = r0 + jax.lax.broadcasted_iota(jnp.int32, (tile_s, 1), 0)
        valid = rows < n_samples
        zb = jnp.where(valid, zb, 0.0)

    lp = jnp.sum(zb * w_ref[...])

    # sigma2 is the last column of the already-loaded tile.
    s = zb[:, d - 1:d]
    if needs_mask:
        s = jnp.where(valid, s, 1.0)
    contrib = -(k + 1.0) * jnp.log(s) - theta * (1.0 / s)
    if needs_mask:
        contrib = jnp.where(valid, contrib, 0.0)
    lp = lp + jnp.sum(contrib)

    out_ref[...] = jnp.full(out_ref.shape, lp, dtype=out_ref.dtype)


# ----------------------------------------------------------------------------
# Wrapper
# ----------------------------------------------------------------------------
def prior_model_nmf_forward(z, *, N, W, alpha, beta, k, theta,
                            max_block_rows=None):
    """Scalar log-prior of z (shape [S, N+W+1]) == PriorModelNMF.forward(z)."""
    z = jnp.asarray(z)
    if z.dtype not in (jnp.float32, jnp.bfloat16):
        z = z.astype(jnp.float32)          # keep bf16 as-is: halves HBM traffic
    S, D = z.shape
    assert D == N + W + 1, "z last dim must be N + W + 1"

    alpha32 = jnp.float32(alpha)
    beta32 = jnp.float32(beta)
    k32 = jnp.float32(k)
    theta32 = jnp.float32(theta)

    # Closed-form constants with the true S (never affected by tiling/masking).
    const = ((S * N) * jnp.log(alpha32)
             + (S * W) * jnp.log(beta32)
             + S * (k32 * jnp.log(theta32) - gammaln(k32)))

    if max_block_rows is None:
        target_rows = _default_target_rows()
    else:
        target_rows = max(8, _round_down(int(max_block_rows), 8))

    # Per-column weights: -alpha on A, -beta on B, 0 on sigma2.
    pattern = jnp.concatenate([
        jnp.full((N,), -alpha32, dtype=jnp.float32),
        jnp.full((W,), -beta32, dtype=jnp.float32),
        jnp.zeros((1,), dtype=jnp.float32)])

    itemsize = z.dtype.itemsize
    total_elems = S * D
    out_block_bytes = 8 * 128 * 4

    # ---------------- lane-dense flat path: z viewed as [R, 128] (free bitcast,
    # no copy); periodic weight slab handles any D.
    g = math.gcd(D, 128)
    p_rows = D // g                                   # weight period in folded rows
    align = 8 if p_rows == 1 else (p_rows * 8 // math.gcd(p_rows, 8))
    R = total_elems // 128
    use_fold = (total_elems % 128 == 0) and (R >= align) and (align <= target_rows)

    if use_fold:
        w_rows = 1 if p_rows == 1 else align
        tile_rows = min(_round_down(target_rows, align), _round_down(R, align))
        grid = -(-R // tile_rows)
        needs_mask = (grid * tile_rows != R)

        z_fold = z.reshape(R, 128)                    # contiguous -> no copy

        idx = jnp.arange(w_rows * 128, dtype=jnp.int32) % D
        w_slab = pattern[idx].reshape(w_rows, 128)

        # Lane-dense sigma2 slab, one slice per grid block (padded with 1.0;
        # each pad slot contributes exactly -theta -> corrected below).
        rs = -(-S // 128)
        sig_tile = max(8, _round_up(-(-rs // grid), 8))
        sig_rows = grid * sig_tile
        n_sig_pad = sig_rows * 128 - S
        sig = z[:, -1].astype(jnp.float32)
        if n_sig_pad:
            sig = jnp.concatenate([sig, jnp.ones((n_sig_pad,), jnp.float32)])
        sig_mat = sig.reshape(sig_rows, 128)

        f32_block = tile_rows * 128 * 4
        vmem_need = (2 * tile_rows * 128 * itemsize        # double-buffered z
                     + 4 * f32_block                       # elementwise temporaries
                     + 2 * sig_tile * 128 * 4              # double-buffered sigma
                     + 2 * out_block_bytes
                     + w_rows * 128 * 4 + _MIB)
        vmem_limit = int(max(32 * _MIB, vmem_need + 8 * _MIB))

        kernel = functools.partial(
            _fold_kernel, k=float(k), theta=float(theta), tile_rows=tile_rows,
            w_rows=w_rows, total_rows=R, needs_mask=needs_mask)

        partials = pl.pallas_call(
            kernel,
            out_shape=jax.ShapeDtypeStruct((grid, 8, 128), jnp.float32),
            grid=(grid,),
            in_specs=[
                pl.BlockSpec((tile_rows, 128), lambda i: (i, 0)),
                pl.BlockSpec((w_rows, 128), lambda i: (0, 0)),
                pl.BlockSpec((sig_tile, 128), lambda i: (i, 0)),
            ],
            out_specs=pl.BlockSpec((1, 8, 128), lambda i: (i, 0, 0)),
            compiler_params=pltpu.CompilerParams(
                dimension_semantics=("parallel",),
                vmem_limit_bytes=vmem_limit),
        )(z_fold, w_slab, sig_mat)
        return jnp.sum(partials[:, 0, 0]) + const + theta32 * n_sig_pad

    # ---------------- un-folded fallback: z stays [S, D] (no copy); lane-sparse
    # tiles but HBM traffic is still exactly one pass over z.
    lanes_pad = _round_up(D, 128)
    target_s = max(8, _round_down(max(8, target_rows * 128 // lanes_pad), 8))
    if S >= 8:
        z_in = z
        tile_s = max(8, min(target_s, _round_down(S, 8)))
    else:
        # tiny input: pad to one 8-row block (copies < 8*D elements)
        z_in = jnp.concatenate([z, jnp.zeros((8 - S, D), z.dtype)], axis=0)
        tile_s = 8
    n_rows_in = z_in.shape[0]
    grid = -(-n_rows_in // tile_s)
    needs_mask = (grid * tile_s != S)

    w_row = pattern.reshape(1, D)

    f32_block = tile_s * lanes_pad * 4
    vmem_need = (2 * tile_s * lanes_pad * itemsize + 4 * f32_block
                 + 2 * out_block_bytes + lanes_pad * 4 + _MIB)
    vmem_limit = int(max(32 * _MIB, vmem_need + 8 * _MIB))

    kernel = functools.partial(
        _plain_kernel, k=float(k), theta=float(theta), tile_s=tile_s,
        n_samples=S, d=D, needs_mask=needs_mask)

    partials = pl.pallas_call(
        kernel,
        out_shape=jax.ShapeDtypeStruct((grid, 8, 128), jnp.float32),
        grid=(grid,),
        in_specs=[
            pl.BlockSpec((tile_s, D), lambda i: (i, 0)),
            pl.BlockSpec((1, D), lambda i: (0, 0)),
        ],
        out_specs=pl.BlockSpec((1, 8, 128), lambda i: (i, 0, 0)),
        compiler_params=pltpu.CompilerParams(
            dimension_semantics=("parallel",),
            vmem_limit_bytes=vmem_limit),
    )(z_in, w_row)
    return jnp.sum(partials[:, 0, 0]) + const


def _reference_forward(z, *, N, W, alpha, beta, k, theta):
    """Pure-JAX reference mirroring the PyTorch module exactly."""
    z = jnp.asarray(z).astype(jnp.float32)
    A = z[:, :N]
    B = z[:, N:N + W]
    sigma2 = z[:, -1]
    lp_A = jnp.sum(jnp.log(alpha) - alpha * A)
    lp_B = jnp.sum(jnp.log(beta) - beta * B)
    lp_s = jnp.sum(k * jnp.log(theta) - gammaln(k)
                   - (k + 1.0) * jnp.log(sigma2) - theta / sigma2)
    return lp_A + lp_B + lp_s


if __name__ == "__main__":
    alpha, beta, k, theta = 1.5, 0.8, 2.0, 3.0

    def check(z, N, W, max_block_rows=None):
        out = prior_model_nmf_forward(z, N=N, W=W, alpha=alpha, beta=beta,
                                      k=k, theta=theta,
                                      max_block_rows=max_block_rows)
        out = jax.block_until_ready(out)
        ref = _reference_forward(z, N=N, W=W, alpha=jnp.float32(alpha),
                                 beta=jnp.float32(beta), k=jnp.float32(k),
                                 theta=jnp.float32(theta))
        assert jnp.allclose(out, ref, rtol=1e-4, atol=1e-2), (out, ref)

    # 1) Tiny S (single un-folded block, no masking).
    N1, W1 = 16, 15                                  # D = 32
    z1 = jax.random.uniform(jax.random.PRNGKey(0), (8, N1 + W1 + 1),
                            dtype=jnp.float32, minval=0.1, maxval=2.0)
    check(z1, N1, W1)

    # 2) Lane-dense fold path: multi-block grid, partial last block (row mask),
    #    grid-tiled sigma2 slab with 1.0-pad correction.
    z2 = jax.random.uniform(jax.random.PRNGKey(1), (200, N1 + W1 + 1),
                            dtype=jnp.float32, minval=0.1, maxval=2.0)
    check(z2, N1, W1, max_block_rows=16)

    # 3) D with S*D % 128 != 0 -> un-folded fallback, multi-block + row mask.
    N3, W3 = 16, 16                                  # D = 33
    z3 = jax.random.uniform(jax.random.PRNGKey(2), (24, N3 + W3 + 1),
                            dtype=jnp.float32, minval=0.1, maxval=2.0)
    check(z3, N3, W3, max_block_rows=16)

    # 4) bf16 input on the fold path with auto block size (no wrapper upcast).
    z4 = jax.random.uniform(jax.random.PRNGKey(3), (1000, N1 + W1 + 1),
                            dtype=jnp.float32, minval=0.1, maxval=2.0
                            ).astype(jnp.bfloat16)
    check(z4, N1, W1)

    print("KERNEL_OK")
</pallas_src>

<mosaic_0001>
module attributes {stable_mosaic.version = 11 : i64} {
  func.func @_plain_kernel(%arg0: i32, %arg1: memref<8x32xf32, #tpu.memory_space<vmem>>, %arg2: memref<1x32xf32, #tpu.memory_space<vmem>>, %arg3: memref<1x8x128xf32, #tpu.memory_space<vmem>>) attributes {dimension_semantics = [#tpu.dimension_semantics<parallel>], iteration_bounds = array<i64: 1>, scalar_prefetch = 0 : i64, scratch_operands = 0 : i64, tpu.core_type = #tpu.core_type<tc>, window_params = [{transform_indices = @transform_0, window_bounds = array<i64: 8, 32>}, {pipeline_mode = #tpu.pipeline_mode<synchronous>, transform_indices = @transform_1, window_bounds = array<i64: 1, 32>}, {transform_indices = @transform_2, window_bounds = array<i64: 1, 8, 128>}]} {
    %c0 = arith.constant 0 : index
    %c0_0 = arith.constant 0 : index
    %0 = vector.load %arg1[%c0, %c0_0] : memref<8x32xf32, #tpu.memory_space<vmem>>, vector<8x32xf32>
    %c0_1 = arith.constant 0 : index
    %c0_2 = arith.constant 0 : index
    %1 = vector.load %arg2[%c0_1, %c0_2] : memref<1x32xf32, #tpu.memory_space<vmem>>, vector<1x32xf32>
    %2 = vector.broadcast %1 : vector<1x32xf32> to vector<8x32xf32>
    %3 = arith.mulf %0, %2 : vector<8x32xf32>
    %4 = vector.shape_cast %3 : vector<8x32xf32> to vector<1x8x32xf32>
    %cst = arith.constant dense<0.000000e+00> : vector<1xf32>
    %5 = vector.multi_reduction <add>, %4, %cst [1, 2] : vector<1x8x32xf32> to vector<1xf32>
    %6 = vector.shape_cast %5 : vector<1xf32> to vector<1x1x1xf32>
    %7 = vector.extract %6[0, 0, 0] : f32 from vector<1x1x1xf32>
    %8 = vector.extract_strided_slice %0 {offsets = [0, 31], sizes = [8, 1], strides = [1, 1]} : vector<8x32xf32> to vector<8x1xf32>
    %9 = math.log %8 : vector<8x1xf32>
    %cst_3 = arith.constant -3.000000e+00 : f32
    %10 = vector.broadcast %cst_3 : f32 to vector<8x1xf32>
    %11 = arith.mulf %10, %9 : vector<8x1xf32>
    %cst_4 = arith.constant 1.000000e+00 : f32
    %12 = vector.broadcast %cst_4 : f32 to vector<8x1xf32>
    %13 = arith.divf %12, %8 : vector<8x1xf32>
    %cst_5 = arith.constant 3.000000e+00 : f32
    %14 = vector.broadcast %cst_5 : f32 to vector<8x1xf32>
    %15 = arith.mulf %14, %13 : vector<8x1xf32>
    %16 = arith.subf %11, %15 : vector<8x1xf32>
    %17 = vector.shape_cast %16 : vector<8x1xf32> to vector<1x8x1xf32>
    %cst_6 = arith.constant dense<0.000000e+00> : vector<1xf32>
    %18 = vector.multi_reduction <add>, %17, %cst_6 [1, 2] : vector<1x8x1xf32> to vector<1xf32>
    %19 = vector.shape_cast %18 : vector<1xf32> to vector<1x1x1xf32>
    %20 = vector.extract %19[0, 0, 0] : f32 from vector<1x1x1xf32>
    %21 = arith.addf %7, %20 : f32
    %22 = vector.broadcast %21 : f32 to vector<1x8x128xf32>
    %c0_7 = arith.constant 0 : index
    %c0_8 = arith.constant 0 : index
    %c0_9 = arith.constant 0 : index
    %23 = vector.load %arg3[%c0_7, %c0_8, %c0_9] : memref<1x8x128xf32, #tpu.memory_space<vmem>>, vector<1x8x128xf32>
    tpu.vector_store %arg3[%c0_7, %c0_8, %c0_9], %22 {strides = array<i32>} : memref<1x8x128xf32, #tpu.memory_space<vmem>>, vector<1x8x128xf32>,
    return
  }
  func.func @transform_0(%arg0: i32) -> (i32, i32) {
    %c0_i32 = arith.constant 0 : i32
    %c0_i32_0 = arith.constant 0 : i32
    return %arg0, %c0_i32 : i32, i32
  }
  func.func @transform_1(%arg0: i32) -> (i32, i32) {
    %c0_i32 = arith.constant 0 : i32
    %c0_i32_0 = arith.constant 0 : i32
    %c0_i32_1 = arith.constant 0 : i32
    return %c0_i32, %c0_i32_0 : i32, i32
  }
  func.func @transform_2(%arg0: i32) -> (i32, i32, i32) {
    %c0_i32 = arith.constant 0 : i32
    %c0_i32_0 = arith.constant 0 : i32
    %c0_i32_1 = arith.constant 0 : i32
    return %arg0, %c0_i32, %c0_i32_0 : i32, i32, i32
  }
}

</mosaic_0001>

<bundles_post_ra>
// kernel: tpu_custom_call.1
= control target key start
LH: loop header
LB: loop body
LE: loop exit
PB: predicated region body
PF: predicated region fallthrough
CT: control target
= control target key end

     0   :  { %7 = vsyncpa [#allocation3], 0  ;;  %s189_s0 = inlined_call_operand.hbm [shape: f32[8,32], index: 0, kind: input, shape index: {}]   ;;  %s190_s1 = inlined_call_operand.vmem [shape: f32[1,32], index: 1, kind: input, shape index: {}]   ;;  %s191_s2 = inlined_call_operand.hbm [shape: f32[1,8,128], index: 2, kind: output, shape index: {}]  }
   0x1   :  { %8 = vsyncpa [#allocation4], 0  ;;  %s144_s9 = smov [#allocation2]   ;;  %s96_s13 = scalar_lea.hbm %s189_s0, 128 }
   0x2   :  { %s15_s10 = sshll.u32 %s144_s9, 4  ;;  %p97_p0 = scmp.ne.s32.totalorder %s189_s0, %s96_s13  ;;  %s16_s10 = int_to_ptr.vmem [resolvable:$true] %s15_s10 }
   0x3   :  { %p100_p1 = scmp.lt.u32.totalorder %s96_s13, %s189_s0 }
   0x5   :  { %p102_p2 = pnand %p100_p1, %p97_p0 }
   0x7   :  { %105 = shalt.err (!%p102_p2)
}
   0x8   :  { %s106_s18 = scalar_lea.vmem %s16_s10, 128  ;;  %p111_p4 = scmp.lt.s32.totalorder %s16_s10, %s16_s10 }
   0x9   :  { %p107_p3 = scmp.ne.s32.totalorder %s16_s10, %s106_s18  ;;  %p112_p5 = scmp.lt.s32.totalorder %s106_s18, %s106_s18 }
   0xb   :  { %p113_p6 = por %p112_p5, %p111_p4 }
   0xd   :  { %p114_p7 = pnand %p113_p6, %p107_p3 }
   0xf   :  { %117 = shalt.err (!%p114_p7)
}
  0x10   :  { %18 = dma.hbm_to_vmem [thread:$0]  %s189_s0, 128, %s16_s10, [#allocation3]  }
  0x11   :  { %140 = dma.done.wait [#allocation3], 128  }
  0x12   :  { %141 = vsyncadd [#allocation3], 4294967168  ;;  %v24_v0 = vld [vmem:[#allocation2] sm:$0xff]  ;;  %s145_s21 = smov 97   ;;  %vm33_vm0 = vcmask 261120   ;;  %vm55_vm1 = vcmask 7168  }
  0x13   :  { %92 = vlog2.f32 %v24_v0  ;;  %v84_v7 = vld [vmem:[%s190_s1] ss:$0 sm:$0xff]  ;;  %s146_s1 = smov [#allocation5]  }
  0x14   :  { %94 = vrcp.f32 %v24_v0  ;;  %v32_v8 = vmul.f32 %v84_v7, %v24_v0  ;;  %s75_s24 = sshll.u32 %s146_s1, 4  ;;  %s76_s24 = int_to_ptr.vmem [resolvable:$true] %s75_s24 }
  0x15   :  { %s118_s27 = scalar_lea.vmem %s76_s24, 128  ;;  %p123_p9 = scmp.lt.s32.totalorder %s76_s24, %s76_s24 }
  0x16   :  { %v34_v9 = vsel %vm33_vm0, %v32_v8, 0.0  ;;  %p119_p8 = scmp.ne.s32.totalorder %s76_s24, %s118_s27  ;;  %p124_p10 = scmp.lt.s32.totalorder %s118_s27, %s118_s27 }
  0x18   :  { %p125_p11 = por %p124_p10, %p123_p9 }
  0x1a   :  { %p126_p12 = pnand %p125_p11, %p119_p8 }
  0x1d   :  { %v93_v1 = vpop.eup %92 }
  0x1e   :  { %v95_v2 = vpop.eup %94  ;;  %v45_v3 = vmul.f32 0.6931472, %v93_v1 }
  0x1f   :  { %v49_v4 = vmul.f32 3.0, %v95_v2 }
  0x20   :  { %v46_v5 = vmul.f32 -3.0, %v45_v3 }
  0x22   :  { %v50_v6 = vsub.f32 %v46_v5, %v49_v4 }
  0x24   :  { %52 = vrot.lane.b32.xlu0 %v50_v6, %s145_s21 }
  0x43   :  { %35 = vadd.xlane.f32.xlu0 %v34_v9 }
  0x96   :  { %v53_v10 = vpop.permute.xlu0 %52 }
  0x97   :  { %v56_v11 = vsel %vm55_vm1, %v53_v10, 0.0 }
  0x98   :  { %57 = vadd.xlane.f32.xlu1 %v56_v11 }
  0xd0   :  { %v36_v12 = vpop.xlane.xlu0 %35 }
  0xd1   :  { %v37_v13 = vrot.slane %v36_v12, 4 }
  0xd3   :  { %v38_v14 = vadd.f32 %v37_v13, %v36_v12 }
  0xd5   :  { %v39_v15 = vrot.slane %v38_v14, 2 }
  0xd7   :  { %v40_v16 = vadd.f32 %v39_v15, %v38_v14 }
  0xd9   :  { %v41_v17 = vrot.slane %v40_v16, 1 }
  0xdb   :  { %v42_v18 = vadd.f32 %v41_v17, %v40_v16 }
  0xdd   :  { %85 = vpush %v42_v18 }
 0x10e   :  { %s86_s0 = spop %85 }
 0x125   :  { %v58_v19 = vpop.xlane.xlu1 %57 }
 0x126   :  { %v59_v20 = vrot.slane %v58_v19, 4 }
 0x128   :  { %v60_v21 = vadd.f32 %v59_v20, %v58_v19 }
 0x12a   :  { %v61_v22 = vrot.slane %v60_v21, 2 }
 0x12c   :  { %v62_v23 = vadd.f32 %v61_v22, %v60_v21 }
 0x12e   :  { %v63_v24 = vrot.slane %v62_v23, 1 }
 0x130   :  { %v64_v25 = vadd.f32 %v63_v24, %v62_v23 }
 0x132   :  { %87 = vpush %v64_v25 }
 0x163   :  { %s88_s25 = spop %87 }
 0x164   :  { %s66_s26 = sadd.f32 %s88_s25, %s86_s0 }
 0x166   :  { %v67_v26 = vstv %s66_s26 }
 0x167   :  { %68 = vst [vmem:[#allocation5] sm:$0xff] %v67_v26 }
 0x168   :  { %129 = shalt.err (!%p126_p12)
}
 0x169   :  { %s130_s30 = scalar_lea.hbm %s191_s2, 128 }
 0x16a   :  { %p131_p13 = scmp.ne.s32.totalorder %s191_s2, %s130_s30  ;;  %p134_p0 = scmp.lt.u32.totalorder %s130_s30, %s191_s2 }
 0x16c   :  { %p136_p1 = pnand %p134_p0, %p131_p13 }
 0x16e   :  { %139 = shalt.err (!%p136_p1)
}
 0x16f   :  { %78 = dma.vmem_to_hbm [thread:$0]  %s76_s24, 128, %s191_s2, [#allocation4]  }
 0x170   :  { %142 = dma.done.wait [#allocation4], 128  }
 0x171   :  { %143 = vsyncadd [#allocation4], 4294967168 }
 0x172   :  { %82 = vsyncpa [#allocation3], 1 }
 0x173   :  { %83 = vsyncpa [#allocation4], 1 }

</bundles_post_ra>
